<compile_context>
chip_gen: v6e
topology: v6e:2x2x1
jax: 0.10.0
libtpu: 0.0.40
codegen_flags: <defaults>
</compile_context>

<pallas_src>
import functools

import jax
import jax.numpy as jnp
from jax.experimental import pallas as pl
from jax.experimental.pallas import tpu as pltpu


def _round_up(x, m):
    return (x + m - 1) // m * m


def _vmem_limit_bytes():
    """Generation-aware VMEM cap: ~80% of physical, bounded at 112 MiB."""
    cap = 64 * 1024 * 1024
    try:
        cap = int(getattr(pltpu.get_tpu_info(), "vmem_capacity_bytes", cap))
    except Exception:
        pass
    return min(int(cap * 0.8), 112 * 1024 * 1024)


def _proj_lstm_cell_kernel(
    x_ref,       # (bn, D)        input activations (f32 in HBM; cast to compute dtype)
    h_ref,       # (bn, Hp)       previous hidden state (padded)
    c_ref,       # (bn, Hp)       previous cell state (f32, padded)
    wih_ref,     # (D, 4*Hp)      input->gates weights (compute dtype, per-gate padded)
    whh_ref,     # (Hp, 4*Hp)     hidden->gates weights (compute dtype, padded)
    bias_ref,    # (1, 4*Hp)      pre-summed bias_ih + bias_hh (f32, per-gate padded)
    peep_ref,    # (3, Hp)        [w_ic, w_fc, w_oc] peephole diagonals (f32)
    whm_ref,     # (Hp, Pp)       projection weights (compute dtype, zero-padded)
    h_out_ref,   # (bn, Pp)
    c_out_ref,   # (bn, Hp)
    *, hidden_pad,
):
    H = hidden_pad
    cdt = wih_ref.dtype

    prev_c = c_ref[...].astype(jnp.float32)

    # Two MXU matmuls accumulating into one f32 affine (no wrapper-side concat).
    affine = jnp.dot(x_ref[...].astype(cdt), wih_ref[...],
                     preferred_element_type=jnp.float32)
    affine = affine + jnp.dot(h_ref[...].astype(cdt), whh_ref[...],
                              preferred_element_type=jnp.float32)
    affine = affine + bias_ref[...]            # (1, 4*Hp) broadcasts over batch

    # Lane-aligned per-gate slices (Hp is a multiple of 128).
    ai = affine[:, 0 * H:1 * H]
    af = affine[:, 1 * H:2 * H]
    ag = affine[:, 2 * H:3 * H]
    ao = affine[:, 3 * H:4 * H]

    wic = peep_ref[0:1, :]
    wfc = peep_ref[1:2, :]
    woc = peep_ref[2:3, :]

    # Gate elementwise math in f32 (VPU/EUP); peepholes broadcast over batch.
    i_gate = jax.nn.sigmoid(ai + prev_c * wic)
    f_gate = jax.nn.sigmoid(af + prev_c * wfc)
    g_gate = jnp.tanh(ag)
    next_c = f_gate * prev_c + i_gate * g_gate
    o_gate = jax.nn.sigmoid(ao + next_c * woc)
    next_h = o_gate * jnp.tanh(next_c)

    c_out_ref[...] = next_c.astype(c_out_ref.dtype)
    # Projection matmul: (bn, Hp) @ (Hp, Pp) -> lane-dense padded output.
    h_out_ref[...] = jnp.dot(next_h.astype(whm_ref.dtype), whm_ref[...],
                             preferred_element_type=jnp.float32
                             ).astype(h_out_ref.dtype)


def prepare_params(params, *, compute_dtype=jnp.bfloat16):
    """One-time parameter packing + lane padding (do NOT call per step)."""
    D = params["weight_ih"].shape[0]
    H = params["weight_hh"].shape[0]
    P = params["weight_hm"].shape[1]
    H_pad = _round_up(H, 128)
    P_pad = _round_up(P, 128)

    def pad_gate_cols(w):
        # (K, 4H) -> (K, 4*H_pad), padding each gate block independently so the
        # [i, f, g, o] ordering is preserved at lane-aligned offsets.
        K = w.shape[0]
        w = w.reshape(K, 4, H)
        w = jnp.pad(w, ((0, 0), (0, 0), (0, H_pad - H)))
        return w.reshape(K, 4 * H_pad)

    w_ih = pad_gate_cols(params["weight_ih"]).astype(compute_dtype)

    w_hh = jnp.pad(params["weight_hh"], ((0, H_pad - H), (0, 0)))
    w_hh = pad_gate_cols(w_hh).astype(compute_dtype)

    bias = (params["bias_ih"] + params["bias_hh"]).reshape(4, H)
    bias = jnp.pad(bias, ((0, 0), (0, H_pad - H)))
    bias = bias.reshape(1, 4 * H_pad).astype(jnp.float32)

    peep = jnp.stack(
        [params["weight_ic_diag"], params["weight_fc_diag"], params["weight_oc_diag"]],
        axis=0)
    peep = jnp.pad(peep, ((0, 0), (0, H_pad - H))).astype(jnp.float32)

    w_proj = jnp.pad(params["weight_hm"],
                     ((0, H_pad - H), (0, P_pad - P))).astype(compute_dtype)

    return {"w_ih": w_ih, "w_hh": w_hh, "bias": bias, "peepholes": peep,
            "w_proj": w_proj}


def proj_lstm_cell(x, prev_h, prev_c, prep, *, hidden_size, proj_size):
    """One ProjLSTMCell step. Returns (next_h: (N, P), next_c: (N, H))."""
    N, D = x.shape
    H = hidden_size
    P = proj_size

    w_ih = prep["w_ih"]              # (D, 4*Hp)
    w_hh = prep["w_hh"]              # (Hp, 4*Hp)
    bias = prep["bias"]              # (1, 4*Hp)
    peep = prep["peepholes"]         # (3, Hp)
    w_proj = prep["w_proj"]          # (Hp, Pp)
    H_pad = w_hh.shape[0]
    P_pad = w_proj.shape[1]
    cdt = jnp.dtype(w_ih.dtype)

    # bf16 packs (16,128) per vreg -> round batch tiles to 16 rows on that path.
    row_mult = 16 if cdt == jnp.dtype(jnp.bfloat16) else 8

    # Batch tiling: split into >= 2 tiles once N >= 32 so the "parallel" axis
    # shards across v7x's two TensorCores; keep 256-row tiles for large N.
    if N >= 512:
        block_n = 256
    elif N >= 32:
        block_n = min(256, _round_up(-(-N // 2), row_mult))
    else:
        block_n = _round_up(max(N, 1), row_mult)
    N_pad = _round_up(N, block_n)
    grid = (N_pad // block_n,)

    # Pad activations: H lanes (only if H not a multiple of 128) and batch rows.
    x_in, h_in, c_in = x, prev_h, prev_c
    if H_pad != H:
        h_in = jnp.pad(h_in, ((0, 0), (0, H_pad - H)))
        c_in = jnp.pad(c_in, ((0, 0), (0, H_pad - H)))
    if N_pad != N:
        x_in = jnp.pad(x_in, ((0, N_pad - N), (0, 0)))
        h_in = jnp.pad(h_in, ((0, N_pad - N), (0, 0)))
        c_in = jnp.pad(c_in, ((0, N_pad - N), (0, 0)))

    kernel = functools.partial(_proj_lstm_cell_kernel, hidden_pad=H_pad)

    # Pinned (constant-index) parameter specs: single-buffered, VMEM-resident.
    def pinned(shape):
        return pl.BlockSpec(shape, lambda i: (0, 0), pipeline_mode=pl.Buffered(1))

    h_pad_out, c_pad_out = pl.pallas_call(
        kernel,
        out_shape=(
            jax.ShapeDtypeStruct((N_pad, P_pad), x.dtype),
            jax.ShapeDtypeStruct((N_pad, H_pad), prev_c.dtype),
        ),
        grid=grid,
        in_specs=[
            pl.BlockSpec((block_n, D), lambda i: (i, 0)),       # x tiled over batch
            pl.BlockSpec((block_n, H_pad), lambda i: (i, 0)),   # prev_h
            pl.BlockSpec((block_n, H_pad), lambda i: (i, 0)),   # prev_c
            pinned((D, 4 * H_pad)),                             # W_ih
            pinned((H_pad, 4 * H_pad)),                         # W_hh
            pinned((1, 4 * H_pad)),                             # bias
            pinned((3, H_pad)),                                 # peepholes
            pinned((H_pad, P_pad)),                             # W_hm
        ],
        out_specs=(
            pl.BlockSpec((block_n, P_pad), lambda i: (i, 0)),
            pl.BlockSpec((block_n, H_pad), lambda i: (i, 0)),
        ),
        compiler_params=pltpu.CompilerParams(
            dimension_semantics=("parallel",),
            vmem_limit_bytes=_vmem_limit_bytes(),
        ),
    )(x_in, h_in, c_in, w_ih, w_hh, bias, peep, w_proj)

    next_h = h_pad_out[:N, :P]
    next_c = c_pad_out[:N, :H]
    return next_h, next_c


def init_params(key, input_size, hidden_size, proj_size, dtype=jnp.float32):
    """Deterministic uniform(-stdv, stdv) init, matching the PyTorch module."""
    stdv = 1.0 / jnp.sqrt(jnp.asarray(hidden_size, dtype))
    names_shapes = [
        ("weight_ih", (input_size, 4 * hidden_size)),
        ("weight_hh", (hidden_size, 4 * hidden_size)),
        ("weight_ic_diag", (hidden_size,)),
        ("weight_fc_diag", (hidden_size,)),
        ("weight_oc_diag", (hidden_size,)),
        ("weight_hm", (hidden_size, proj_size)),
        ("bias_ih", (4 * hidden_size,)),
        ("bias_hh", (4 * hidden_size,)),
    ]
    keys = jax.random.split(key, len(names_shapes))
    params = {}
    for k, (name, shape) in zip(keys, names_shapes):
        params[name] = jax.random.uniform(
            k, shape, dtype=dtype, minval=-stdv, maxval=stdv)
    return params


def proj_lstm_cell_reference(x, prev_h, prev_c, params, *, hidden_size):
    """Pure-JAX reference mirroring the PyTorch forward (peepholes + proj)."""
    H = hidden_size
    affine = x @ params["weight_ih"] + prev_h @ params["weight_hh"]
    affine = affine + params["bias_ih"] + params["bias_hh"]
    ai, af, ag, ao = (affine[:, i * H:(i + 1) * H] for i in range(4))
    i = jax.nn.sigmoid(ai + prev_c * params["weight_ic_diag"])
    f = jax.nn.sigmoid(af + prev_c * params["weight_fc_diag"])
    g = jnp.tanh(ag)
    next_c = f * prev_c + i * g
    o = jax.nn.sigmoid(ao + next_c * params["weight_oc_diag"])
    next_h = o * jnp.tanh(next_c)
    next_h = next_h @ params["weight_hm"]
    return next_h, next_c


if __name__ == "__main__":
    # Small shapes consistent with forward(): input (N, D), prev_h/prev_c (N, H).
    N, D, H, P = 8, 16, 32, 16

    key = jax.random.PRNGKey(0)
    kp, kx, kh, kc = jax.random.split(key, 4)

    params = init_params(kp, input_size=D, hidden_size=H, proj_size=P)
    x = jax.random.normal(kx, (N, D), dtype=jnp.float32)
    prev_h = jax.random.normal(kh, (N, H), dtype=jnp.float32)
    prev_c = jax.random.normal(kc, (N, H), dtype=jnp.float32)

    step = jax.jit(proj_lstm_cell, static_argnames=("hidden_size", "proj_size"))
    ref_h, ref_c = proj_lstm_cell_reference(
        x, prev_h, prev_c, params, hidden_size=H)

    # --- f32 MXU path: strict check against the pure-JAX reference. ---
    prep_f32 = prepare_params(params, compute_dtype=jnp.float32)
    next_h, next_c = step(x, prev_h, prev_c, prep_f32, hidden_size=H, proj_size=P)
    jax.block_until_ready((next_h, next_c))
    assert next_h.shape == (N, P) and next_c.shape == (N, H)
    assert jnp.allclose(next_h, ref_h, atol=1e-5, rtol=1e-5)
    assert jnp.allclose(next_c, ref_c, atol=1e-5, rtol=1e-5)

    # --- bf16 MXU path (default; f32 accumulate, f32 elementwise, f32 cell state). ---
    prep_bf16 = prepare_params(params)   # compute_dtype defaults to bf16
    h_bf16, c_bf16 = step(x, prev_h, prev_c, prep_bf16, hidden_size=H, proj_size=P)
    jax.block_until_ready((h_bf16, c_bf16))
    assert jnp.allclose(h_bf16, ref_h, atol=1.5e-1, rtol=1e-1)
    assert jnp.allclose(c_bf16, ref_c, atol=1.5e-1, rtol=1e-1)

    print("KERNEL_OK")
</pallas_src>

<mosaic_0001>
module attributes {stable_mosaic.version = 11 : i64} {
  func.func @_proj_lstm_cell_kernel(%arg0: i32, %arg1: memref<8x16xf32, #tpu.memory_space<vmem>>, %arg2: memref<8x128xf32, #tpu.memory_space<vmem>>, %arg3: memref<8x128xf32, #tpu.memory_space<vmem>>, %arg4: memref<16x512xf32, #tpu.memory_space<vmem>>, %arg5: memref<128x512xf32, #tpu.memory_space<vmem>>, %arg6: memref<1x512xf32, #tpu.memory_space<vmem>>, %arg7: memref<3x128xf32, #tpu.memory_space<vmem>>, %arg8: memref<128x128xf32, #tpu.memory_space<vmem>>, %arg9: memref<8x128xf32, #tpu.memory_space<vmem>>, %arg10: memref<8x128xf32, #tpu.memory_space<vmem>>) attributes {dimension_semantics = [#tpu.dimension_semantics<parallel>], iteration_bounds = array<i64: 1>, scalar_prefetch = 0 : i64, scratch_operands = 0 : i64, tpu.core_type = #tpu.core_type<tc>, window_params = [{transform_indices = @transform_0, window_bounds = array<i64: 8, 16>}, {transform_indices = @transform_1, window_bounds = array<i64: 8, 128>}, {transform_indices = @transform_2, window_bounds = array<i64: 8, 128>}, {pipeline_mode = #tpu.pipeline_mode<synchronous>, transform_indices = @transform_3, window_bounds = array<i64: 16, 512>}, {pipeline_mode = #tpu.pipeline_mode<synchronous>, transform_indices = @transform_4, window_bounds = array<i64: 128, 512>}, {pipeline_mode = #tpu.pipeline_mode<synchronous>, transform_indices = @transform_5, window_bounds = array<i64: 1, 512>}, {pipeline_mode = #tpu.pipeline_mode<synchronous>, transform_indices = @transform_6, window_bounds = array<i64: 3, 128>}, {pipeline_mode = #tpu.pipeline_mode<synchronous>, transform_indices = @transform_7, window_bounds = array<i64: 128, 128>}, {transform_indices = @transform_8, window_bounds = array<i64: 8, 128>}, {transform_indices = @transform_9, window_bounds = array<i64: 8, 128>}]} {
    %c0 = arith.constant 0 : index
    %c0_0 = arith.constant 0 : index
    %0 = vector.load %arg3[%c0, %c0_0] : memref<8x128xf32, #tpu.memory_space<vmem>>, vector<8x128xf32>
    %c0_1 = arith.constant 0 : index
    %c0_2 = arith.constant 0 : index
    %1 = vector.load %arg1[%c0_1, %c0_2] : memref<8x16xf32, #tpu.memory_space<vmem>>, vector<8x16xf32>
    %c0_3 = arith.constant 0 : index
    %c0_4 = arith.constant 0 : index
    %2 = vector.load %arg4[%c0_3, %c0_4] : memref<16x512xf32, #tpu.memory_space<vmem>>, vector<16x512xf32>
    %cst = arith.constant dense<0.000000e+00> : vector<8x512xf32>
    %3 = tpu.matmul %1, %2, %cst {dimension_numbers = #tpu.dot_dimension_numbers<[1], [0], [0], [1], [0, 0, 1, 1], [], []>} : vector<8x16xf32>, vector<16x512xf32>, vector<8x512xf32> -> vector<8x512xf32>
    %c0_5 = arith.constant 0 : index
    %c0_6 = arith.constant 0 : index
    %4 = vector.load %arg2[%c0_5, %c0_6] : memref<8x128xf32, #tpu.memory_space<vmem>>, vector<8x128xf32>
    %c0_7 = arith.constant 0 : index
    %c0_8 = arith.constant 0 : index
    %5 = vector.load %arg5[%c0_7, %c0_8] : memref<128x512xf32, #tpu.memory_space<vmem>>, vector<128x512xf32>
    %cst_9 = arith.constant dense<0.000000e+00> : vector<8x512xf32>
    %6 = tpu.matmul %4, %5, %cst_9 {dimension_numbers = #tpu.dot_dimension_numbers<[1], [0], [0], [1], [0, 0, 1, 1], [], []>} : vector<8x128xf32>, vector<128x512xf32>, vector<8x512xf32> -> vector<8x512xf32>
    %7 = arith.addf %3, %6 : vector<8x512xf32>
    %c0_10 = arith.constant 0 : index
    %c0_11 = arith.constant 0 : index
    %8 = vector.load %arg6[%c0_10, %c0_11] : memref<1x512xf32, #tpu.memory_space<vmem>>, vector<1x512xf32>
    %9 = vector.broadcast %8 : vector<1x512xf32> to vector<8x512xf32>
    %10 = arith.addf %7, %9 : vector<8x512xf32>
    %11 = vector.extract_strided_slice %10 {offsets = [0, 0], sizes = [8, 128], strides = [1, 1]} : vector<8x512xf32> to vector<8x128xf32>
    %12 = vector.extract_strided_slice %10 {offsets = [0, 128], sizes = [8, 128], strides = [1, 1]} : vector<8x512xf32> to vector<8x128xf32>
    %13 = vector.extract_strided_slice %10 {offsets = [0, 256], sizes = [8, 128], strides = [1, 1]} : vector<8x512xf32> to vector<8x128xf32>
    %14 = vector.extract_strided_slice %10 {offsets = [0, 384], sizes = [8, 128], strides = [1, 1]} : vector<8x512xf32> to vector<8x128xf32>
    %c0_12 = arith.constant 0 : index
    %c0_13 = arith.constant 0 : index
    %15 = vector.load %arg7[%c0_12, %c0_13] : memref<3x128xf32, #tpu.memory_space<vmem>>, vector<1x128xf32>
    %c1 = arith.constant 1 : index
    %c0_14 = arith.constant 0 : index
    %16 = vector.load %arg7[%c1, %c0_14] : memref<3x128xf32, #tpu.memory_space<vmem>>, vector<1x128xf32>
    %c2 = arith.constant 2 : index
    %c0_15 = arith.constant 0 : index
    %17 = vector.load %arg7[%c2, %c0_15] : memref<3x128xf32, #tpu.memory_space<vmem>>, vector<1x128xf32>
    %18 = vector.broadcast %15 : vector<1x128xf32> to vector<8x128xf32>
    %19 = arith.mulf %0, %18 : vector<8x128xf32>
    %20 = arith.addf %11, %19 : vector<8x128xf32>
    %21 = arith.negf %20 : vector<8x128xf32>
    %22 = math.exp %21 : vector<8x128xf32>
    %cst_16 = arith.constant 1.000000e+00 : f32
    %23 = vector.broadcast %cst_16 : f32 to vector<8x128xf32>
    %24 = arith.addf %23, %22 : vector<8x128xf32>
    %25 = arith.divf %23, %24 : vector<8x128xf32>
    %26 = vector.broadcast %16 : vector<1x128xf32> to vector<8x128xf32>
    %27 = arith.mulf %0, %26 : vector<8x128xf32>
    %28 = arith.addf %12, %27 : vector<8x128xf32>
    %29 = arith.negf %28 : vector<8x128xf32>
    %30 = math.exp %29 : vector<8x128xf32>
    %cst_17 = arith.constant 1.000000e+00 : f32
    %31 = vector.broadcast %cst_17 : f32 to vector<8x128xf32>
    %32 = arith.addf %31, %30 : vector<8x128xf32>
    %33 = arith.divf %31, %32 : vector<8x128xf32>
    %34 = math.tanh %13 : vector<8x128xf32>
    %35 = arith.mulf %33, %0 : vector<8x128xf32>
    %36 = arith.mulf %25, %34 : vector<8x128xf32>
    %37 = arith.addf %35, %36 : vector<8x128xf32>
    %38 = vector.broadcast %17 : vector<1x128xf32> to vector<8x128xf32>
    %39 = arith.mulf %37, %38 : vector<8x128xf32>
    %40 = arith.addf %14, %39 : vector<8x128xf32>
    %41 = arith.negf %40 : vector<8x128xf32>
    %42 = math.exp %41 : vector<8x128xf32>
    %cst_18 = arith.constant 1.000000e+00 : f32
    %43 = vector.broadcast %cst_18 : f32 to vector<8x128xf32>
    %44 = arith.addf %43, %42 : vector<8x128xf32>
    %45 = arith.divf %43, %44 : vector<8x128xf32>
    %46 = math.tanh %37 : vector<8x128xf32>
    %47 = arith.mulf %45, %46 : vector<8x128xf32>
    %c0_19 = arith.constant 0 : index
    %c0_20 = arith.constant 0 : index
    %48 = vector.load %arg10[%c0_19, %c0_20] : memref<8x128xf32, #tpu.memory_space<vmem>>, vector<8x128xf32>
    tpu.vector_store %arg10[%c0_19, %c0_20], %37 {strides = array<i32>} : memref<8x128xf32, #tpu.memory_space<vmem>>, vector<8x128xf32>,
    %c0_21 = arith.constant 0 : index
    %c0_22 = arith.constant 0 : index
    %49 = vector.load %arg8[%c0_21, %c0_22] : memref<128x128xf32, #tpu.memory_space<vmem>>, vector<128x128xf32>
    %cst_23 = arith.constant dense<0.000000e+00> : vector<8x128xf32>
    %50 = tpu.matmul %47, %49, %cst_23 {dimension_numbers = #tpu.dot_dimension_numbers<[1], [0], [0], [1], [0, 0, 1, 1], [], []>} : vector<8x128xf32>, vector<128x128xf32>, vector<8x128xf32> -> vector<8x128xf32>
    %c0_24 = arith.constant 0 : index
    %c0_25 = arith.constant 0 : index
    %51 = vector.load %arg9[%c0_24, %c0_25] : memref<8x128xf32, #tpu.memory_space<vmem>>, vector<8x128xf32>
    tpu.vector_store %arg9[%c0_24, %c0_25], %50 {strides = array<i32>} : memref<8x128xf32, #tpu.memory_space<vmem>>, vector<8x128xf32>,
    return
  }
  func.func @transform_0(%arg0: i32) -> (i32, i32) {
    %c0_i32 = arith.constant 0 : i32
    %c0_i32_0 = arith.constant 0 : i32
    return %arg0, %c0_i32 : i32, i32
  }
  func.func @transform_1(%arg0: i32) -> (i32, i32) {
    %c0_i32 = arith.constant 0 : i32
    %c0_i32_0 = arith.constant 0 : i32
    return %arg0, %c0_i32 : i32, i32
  }
  func.func @transform_2(%arg0: i32) -> (i32, i32) {
    %c0_i32 = arith.constant 0 : i32
    %c0_i32_0 = arith.constant 0 : i32
    return %arg0, %c0_i32 : i32, i32
  }
  func.func @transform_3(%arg0: i32) -> (i32, i32) {
    %c0_i32 = arith.constant 0 : i32
    %c0_i32_0 = arith.constant 0 : i32
    %c0_i32_1 = arith.constant 0 : i32
    return %c0_i32, %c0_i32_0 : i32, i32
  }
  func.func @transform_4(%arg0: i32) -> (i32, i32) {
    %c0_i32 = arith.constant 0 : i32
    %c0_i32_0 = arith.constant 0 : i32
    %c0_i32_1 = arith.constant 0 : i32
    return %c0_i32, %c0_i32_0 : i32, i32
  }
  func.func @transform_5(%arg0: i32) -> (i32, i32) {
    %c0_i32 = arith.constant 0 : i32
    %c0_i32_0 = arith.constant 0 : i32
    %c0_i32_1 = arith.constant 0 : i32
    return %c0_i32, %c0_i32_0 : i32, i32
  }
  func.func @transform_6(%arg0: i32) -> (i32, i32) {
    %c0_i32 = arith.constant 0 : i32
    %c0_i32_0 = arith.constant 0 : i32
    %c0_i32_1 = arith.constant 0 : i32
    return %c0_i32, %c0_i32_0 : i32, i32
  }
  func.func @transform_7(%arg0: i32) -> (i32, i32) {
    %c0_i32 = arith.constant 0 : i32
    %c0_i32_0 = arith.constant 0 : i32
    %c0_i32_1 = arith.constant 0 : i32
    return %c0_i32, %c0_i32_0 : i32, i32
  }
  func.func @transform_8(%arg0: i32) -> (i32, i32) {
    %c0_i32 = arith.constant 0 : i32
    %c0_i32_0 = arith.constant 0 : i32
    return %arg0, %c0_i32 : i32, i32
  }
  func.func @transform_9(%arg0: i32) -> (i32, i32) {
    %c0_i32 = arith.constant 0 : i32
    %c0_i32_0 = arith.constant 0 : i32
    return %arg0, %c0_i32 : i32, i32
  }
}

</mosaic_0001>

<bundles_post_ra>
// kernel: proj_lstm_cell.1
= control target key start
LH: loop header
LB: loop body
LE: loop exit
PB: predicated region body
PF: predicated region fallthrough
CT: control target
= control target key end

     0   :  { %15 = vsyncpa [#allocation3], 0  ;;  %s941_s0 = inlined_call_operand.vmem [shape: f32[8,16], index: 0, kind: input, shape index: {}]   ;;  %s942_s1 = inlined_call_operand.vmem [shape: f32[8,128], index: 1, kind: input, shape index: {}]   ;;  %s943_s2 = inlined_call_operand.vmem [shape: f32[8,128], index: 2, kind: input, shape index: {}]   ;;  %s944_s3 = inlined_call_operand.hbm [shape: f32[16,512], index: 3, kind: input, shape index: {}]   ;;  %s945_s4 = inlined_call_operand.hbm [shape: f32[128,512], index: 4, kind: input, shape index: {}]   ;;  %s946_s5 = inlined_call_operand.vmem [shape: f32[1,512], index: 5, kind: input, shape index: {}]   ;;  %s947_s6 = inlined_call_operand.vmem [shape: f32[3,128], index: 6, kind: input, shape index: {}]   ;;  %s948_s7 = inlined_call_operand.hbm [shape: f32[128,128], index: 7, kind: input, shape index: {}]   ;;  %s949_s8 = inlined_call_operand.hbm [shape: f32[8,128], index: 8, kind: output, shape index: {0}]   ;;  %s950_s9 = inlined_call_operand.hbm [shape: f32[8,128], index: 9, kind: output, shape index: {1}]  }
   0x1   :  { %16 = vsyncpa [#allocation6], 0 }
   0x2   :  { %17 = vsyncpa [#allocation4], 0 }
   0x3   :  { %18 = vsyncpa [#allocation10], 0  ;;  %s821_s30 = smov [#allocation5]   ;;  %s822_s11 = smov [#allocation2]  }
   0x4   :  { %s42_s10 = sshll.u32 %s821_s30, 4  ;;  %s30_s12 = sshll.u32 %s822_s11, 4  ;;  %s43_s10 = int_to_ptr.vmem [resolvable:$true] %s42_s10  ;;  %s31_s12 = int_to_ptr.vmem [resolvable:$true] %s30_s12 }
   0x5   :  { %s721_s13 = scalar_lea.vmem %s43_s10, 8192  ;;  %p726_p1 = scmp.lt.s32.totalorder %s43_s10, %s43_s10 }
   0x6   :  { %p722_p0 = scmp.ne.s32.totalorder %s43_s10, %s721_s13  ;;  %p727_p2 = scmp.lt.s32.totalorder %s721_s13, %s721_s13 }
   0x8   :  { %p728_p3 = por %p727_p2, %p726_p1 }
   0xa   :  { %p729_p4 = pnand %p728_p3, %p722_p0 }
   0xc   :  { %732 = shalt.err (!%p729_p4)
}
   0xd   :  { %s823_s14 = smov 512   ;;  %s824_s15 = smov 32  }
   0xe   :  { %48 = dma.hbm_to_vmem [thread:$0]  %s945_s4, 8192, %s43_s10, [#allocation6], %s823_s14, %s823_s14, %s824_s15  }
   0xf   :  { %s741_s18 = scalar_lea.vmem %s31_s12, 1024  ;;  %p746_p6 = scmp.lt.s32.totalorder %s31_s12, %s31_s12 }
  0x10   :  { %p742_p5 = scmp.ne.s32.totalorder %s31_s12, %s741_s18  ;;  %p747_p7 = scmp.lt.s32.totalorder %s741_s18, %s741_s18 }
  0x12   :  { %p748_p8 = por %p747_p7, %p746_p6 }
  0x14   :  { %p749_p9 = pnand %p748_p8, %p742_p5 }
  0x16   :  { %752 = shalt.err (!%p749_p9)
}
  0x17   :  { %36 = dma.hbm_to_vmem [thread:$0]  %s944_s3, 1024, %s31_s12, [#allocation3], %s823_s14, %s823_s14, %s824_s15  }
  0x18   :  { %s825_s21 = smov [#allocation7]  }
  0x19   :  { %s58_s22 = sshll.u32 %s825_s21, 4  ;;  %s59_s22 = int_to_ptr.vmem [resolvable:$true] %s58_s22 }
  0x1a   :  { %s761_s23 = scalar_lea.vmem %s59_s22, 2048  ;;  %p766_p11 = scmp.lt.s32.totalorder %s59_s22, %s59_s22 }
  0x1b   :  { %p762_p10 = scmp.ne.s32.totalorder %s59_s22, %s761_s23  ;;  %p767_p12 = scmp.lt.s32.totalorder %s761_s23, %s761_s23 }
  0x1d   :  { %p768_p13 = por %p767_p12, %p766_p11 }
  0x1f   :  { %p769_p0 = pnand %p768_p13, %p762_p10 }
  0x21   :  { %772 = shalt.err (!%p769_p0)
}
  0x22   :  { %s826_s4 = smov 128   ;;  %s827_s24 = smov 8  }
  0x23   :  { %64 = dma.hbm_to_vmem [thread:$0]  %s948_s7, 2048, %s59_s22, [#allocation6], %s826_s4, %s826_s4, %s827_s24  }
  0x24   :  { %813 = dma.done.wait [#allocation3], 1024  }
  0x25   :  { %814 = vsyncadd [#allocation3], 4294966272 }
  0x26   :  { %815 = dma.done.wait [#allocation6], 10240  }
  0x27   :  { %816 = vsyncadd [#allocation6], 4294957056  ;;  %v828_v0 = vmov 0.0   ;;  %v148_v1 = vld [vmem:[#allocation5 + $0x1f8] sm:$0xff]  ;;  %v147_v2 = vld [vmem:[#allocation5 + $0x1f0] sm:$0xff]  ;;  %vm291_vm0 = vcmask 130048  }
  0x28   :  { %284 = vmatprep.mubr.f32.mxu1 %v828_v0  ;;  %213 = vmatprep.mubr.f32.mxu0 %v828_v0  ;;  %v144_v3 = vld [vmem:[#allocation5 + $0x1d8] sm:$0xff]  ;;  %v146_v4 = vld [vmem:[#allocation5 + $0x1e8] sm:$0xff]  ;;  %v143_v5 = vld [vmem:[#allocation5 + $0x1d0] sm:$0xff]  ;;  %vm829_vm1 = vmmov 0   ;;  %s830_s14 = smov [#allocation9]  }
  0x29   :  { %220 = vmatprep.subr.mxu1 %v148_v1  ;;  %v145_v6 = vld [vmem:[#allocation5 + $0x1e0] sm:$0xff]  ;;  %149 = vmatprep.subr.mxu0 %v146_v4  ;;  %v140_v7 = vld [vmem:[#allocation5 + $0x1b8] sm:$0xff]  ;;  %v142_v8 = vld [vmem:[#allocation5 + $0x1c8] sm:$0xff]  ;;  %s612_s15 = sshll.u32 %s830_s14, 4  ;;  %s613_s15 = int_to_ptr.vmem [resolvable:$true] %s612_s15 }
  0x2a   :  { %221 = vmatpush1.msra.mxu1 %v147_v2  ;;  %150 = vmatpush1.msra.mxu0 %v145_v6  ;;  %v139_v9 = vld [vmem:[#allocation5 + $0x1b0] sm:$0xff]  ;;  %v141_v10 = vld [vmem:[#allocation5 + $0x1c0] sm:$0xff]  ;;  %v138_v11 = vld [vmem:[#allocation5 + $0x1a8] sm:$0xff]  ;;  %s773_s16 = scalar_lea.vmem %s613_s15, 128  ;;  %p778_p2 = scmp.lt.s32.totalorder %s613_s15, %s613_s15 }
  0x2b   :  { %222 = vmatprep.subr.mxu1 %v144_v3  ;;  %151 = vmatprep.subr.mxu0 %v142_v8  ;;  %v136_v12 = vld [vmem:[#allocation5 + $0x198] sm:$0xff]  ;;  %v137_v13 = vld [vmem:[#allocation5 + $0x1a0] sm:$0xff]  ;;  %v135_v14 = vld [vmem:[#allocation5 + $0x190] sm:$0xff]  ;;  %p774_p1 = scmp.ne.s32.totalorder %s613_s15, %s773_s16  ;;  %p779_p3 = scmp.lt.s32.totalorder %s773_s16, %s773_s16 }
  0x2c   :  { %223 = vmatpush1.msra.mxu1 %v143_v5  ;;  %152 = vmatpush1.msra.mxu0 %v141_v10  ;;  %v134_v15 = vld [vmem:[#allocation5 + $0x188] sm:$0xff]  ;;  %v132_v16 = vld [vmem:[#allocation5 + $0x178] sm:$0xff]  ;;  %v133_v17 = vld [vmem:[#allocation5 + $0x180] sm:$0xff] }
  0x2d   :  { %224 = vmatprep.subr.mxu1 %v140_v7  ;;  %153 = vmatprep.subr.mxu0 %v138_v11  ;;  %v131_v18 = vld [vmem:[#allocation5 + $0x170] sm:$0xff]  ;;  %v130_v19 = vld [vmem:[#allocation5 + $0x168] sm:$0xff]  ;;  %v128_v20 = vld [vmem:[#allocation5 + $0x158] sm:$0xff]  ;;  %p780_p4 = por %p779_p3, %p778_p2 }
  0x2e   :  { %225 = vmatpush1.msra.mxu1 %v139_v9  ;;  %154 = vmatpush1.msra.mxu0 %v137_v13  ;;  %v129_v21 = vld [vmem:[#allocation5 + $0x160] sm:$0xff]  ;;  %v127_v22 = vld [vmem:[#allocation5 + $0x150] sm:$0xff]  ;;  %v126_v23 = vld [vmem:[#allocation5 + $0x148] sm:$0xff] }
  0x2f   :  { %226 = vmatprep.subr.mxu1 %v136_v12  ;;  %155 = vmatprep.subr.mxu0 %v134_v15  ;;  %v124_v24 = vld [vmem:[#allocation5 + $0x138] sm:$0xff]  ;;  %v125_v25 = vld [vmem:[#allocation5 + $0x140] sm:$0xff]  ;;  %v123_v26 = vld [vmem:[#allocation5 + $0x130] sm:$0xff]  ;;  %p781_p5 = pnand %p780_p4, %p774_p1 }
  0x30   :  { %227 = vmatpush1.msra.mxu1 %v135_v14  ;;  %156 = vmatpush1.msra.mxu0 %v133_v17  ;;  %v122_v27 = vld [vmem:[#allocation5 + $0x128] sm:$0xff]  ;;  %v120_v28 = vld [vmem:[#allocation5 + $0x118] sm:$0xff]  ;;  %v121_v29 = vld [vmem:[#allocation5 + $0x120] sm:$0xff] }
  0x31   :  { %228 = vmatprep.subr.mxu1 %v132_v16  ;;  %157 = vmatprep.subr.mxu0 %v130_v19  ;;  %v119_v30 = vld [vmem:[#allocation5 + $0x110] sm:$0xff]  ;;  %v118_v31 = vld [vmem:[#allocation5 + $0x108] sm:$0xff]  ;;  %v116_v32 = vld [vmem:[#allocation5 + $0xf8] sm:$0xff] }
  0x32   :  { %229 = vmatpush1.msra.mxu1 %v131_v18  ;;  %158 = vmatpush1.msra.mxu0 %v129_v21  ;;  %v117_v33 = vld [vmem:[#allocation5 + $0x100] sm:$0xff]  ;;  %v115_v34 = vld [vmem:[#allocation5 + $0xf0] sm:$0xff]  ;;  %v114_v35 = vld [vmem:[#allocation5 + $0xe8] sm:$0xff] }
  0x33   :  { %230 = vmatprep.subr.mxu1 %v128_v20  ;;  %159 = vmatprep.subr.mxu0 %v126_v23  ;;  %v112_v36 = vld [vmem:[#allocation5 + $0xd8] sm:$0xff]  ;;  %v113_v37 = vld [vmem:[#allocation5 + $0xe0] sm:$0xff]  ;;  %v111_v38 = vld [vmem:[#allocation5 + $0xd0] sm:$0xff] }
  0x34   :  { %231 = vmatpush1.msra.mxu1 %v127_v22  ;;  %160 = vmatpush1.msra.mxu0 %v125_v25  ;;  %v110_v39 = vld [vmem:[#allocation5 + $0xc8] sm:$0xff]  ;;  %v108_v40 = vld [vmem:[#allocation5 + $0xb8] sm:$0xff]  ;;  %v109_v41 = vld [vmem:[#allocation5 + $0xc0] sm:$0xff] }
  0x35   :  { %232 = vmatprep.subr.mxu1 %v124_v24  ;;  %161 = vmatprep.subr.mxu0 %v122_v27  ;;  %v107_v42 = vld [vmem:[#allocation5 + $0xb0] sm:$0xff]  ;;  %v106_v43 = vld [vmem:[#allocation5 + $0xa8] sm:$0xff]  ;;  %v104_v44 = vld [vmem:[#allocation5 + $0x98] sm:$0xff] }
  0x36   :  { %233 = vmatpush1.msra.mxu1 %v123_v26  ;;  %162 = vmatpush1.msra.mxu0 %v121_v29  ;;  %v105_v45 = vld [vmem:[#allocation5 + $0xa0] sm:$0xff]  ;;  %v103_v46 = vld [vmem:[#allocation5 + $0x90] sm:$0xff]  ;;  %v102_v47 = vld [vmem:[#allocation5 + $0x88] sm:$0xff] }
  0x37   :  { %234 = vmatprep.subr.mxu1 %v120_v28  ;;  %163 = vmatprep.subr.mxu0 %v118_v31  ;;  %v100_v48 = vld [vmem:[#allocation5 + $0x78] sm:$0xff]  ;;  %v101_v49 = vld [vmem:[#allocation5 + $0x80] sm:$0xff]  ;;  %v99_v50 = vld [vmem:[#allocation5 + $0x70] sm:$0xff]  ;;  %v439_v28 = vlaneseq }
  0x38   :  { %235 = vmatpush1.msra.mxu1 %v119_v30  ;;  %164 = vmatpush1.msra.mxu0 %v117_v33  ;;  %v98_v51 = vld [vmem:[#allocation5 + $0x68] sm:$0xff]  ;;  %v96_v52 = vld [vmem:[#allocation5 + $0x58] sm:$0xff]  ;;  %v97_v53 = vld [vmem:[#allocation5 + $0x60] sm:$0xff] }
  0x39   :  { %236 = vmatprep.subr.mxu1 %v116_v32  ;;  %165 = vmatprep.subr.mxu0 %v114_v35  ;;  %v95_v54 = vld [vmem:[#allocation5 + $0x50] sm:$0xff]  ;;  %v94_v55 = vld [vmem:[#allocation5 + $0x48] sm:$0xff]  ;;  %v92_v56 = vld [vmem:[#allocation5 + $0x38] sm:$0xff]  ;;  %v440_v29 = vshrl.u32 %v439_v28, 7 }
  0x3a   :  { %237 = vmatpush1.msra.mxu1 %v115_v34  ;;  %166 = vmatpush1.msra.mxu0 %v113_v37  ;;  %v93_v57 = vld [vmem:[#allocation5 + $0x40] sm:$0xff]  ;;  %v91_v58 = vld [vmem:[#allocation5 + $0x30] sm:$0xff]  ;;  %v90_v59 = vld [vmem:[#allocation5 + $0x28] sm:$0xff] }
  0x3b   :  { %238 = vmatprep.subr.mxu1 %v112_v36  ;;  %167 = vmatprep.subr.mxu0 %v110_v39  ;;  %v88_v60 = vld [vmem:[#allocation5 + $0x18] sm:$0xff]  ;;  %v89_v61 = vld [vmem:[#allocation5 + $0x20] sm:$0xff]  ;;  %v87_v62 = vld [vmem:[#allocation5 + $0x10] sm:$0xff]  ;;  %v441_v30 = vsub.s32 0, %v440_v29  ;;  %v445_v33 = vsub.s32 1, %v440_v29 }
  0x3c   :  { %239 = vmatpush1.msra.mxu1 %v111_v38  ;;  %168 = vmatpush1.msra.mxu0 %v109_v41  ;;  %v86_v63 = vld [vmem:[#allocation5 + $0x8] sm:$0xff]  ;;  %v84_v1 = vld [vmem:[%s942_s1] sm:$0xff]  ;;  %v83_v8 = vld [vmem:[#allocation2 + $0x38] sm:$0xff] }
  0x3d   :  { %240 = vmatprep.subr.mxu1 %v108_v40  ;;  %169 = vmatprep.subr.mxu0 %v106_v43  ;;  %v81_v2 = vld [vmem:[#allocation2 + $0x28] sm:$0xff]  ;;  %v80_v3 = vld [vmem:[#allocation2 + $0x20] sm:$0xff]  ;;  %v82_v9 = vld [vmem:[#allocation2 + $0x30] sm:$0xff] }
  0x3e   :  { %241 = vmatpush1.msra.mxu1 %v107_v42  ;;  %170 = vmatpush1.msra.mxu0 %v105_v45  ;;  %v85_v4 = vld [vmem:[#allocation5] sm:$0xff]  ;;  %v77_v5 = vld [vmem:[#allocation2 + $0x8] sm:$0xff]  ;;  %v79_v10 = vld [vmem:[#allocation2 + $0x18] sm:$0xff] }
  0x3f   :  { %242 = vmatprep.subr.mxu1 %v104_v44  ;;  %171 = vmatprep.subr.mxu0 %v102_v47  ;;  %v76_v6 = vld [vmem:[#allocation2] sm:$0xff]  ;;  %v78_v11 = vld [vmem:[#allocation2 + $0x10] sm:$0xff]  ;;  %v524_v12 = vld [vmem:[#allocation7 + $0x78] sm:$0xff] }
  0x40   :  { %243 = vmatpush1.msra.mxu1 %v103_v46  ;;  %172 = vmatpush1.msra.mxu0 %v101_v49  ;;  %v75_v7 = vld [vmem:[%s941_s0] sm:$0xff]  ;;  %v523_v13 = vld [vmem:[#allocation7 + $0x70] sm:$0xff]  ;;  %v522_v14 = vld [vmem:[#allocation7 + $0x68] sm:$0xff] }
  0x41   :  { %244 = vmatprep.subr.mxu1 %v100_v48  ;;  %173 = vmatprep.subr.mxu0 %v98_v51  ;;  %v521_v15 = vld [vmem:[#allocation7 + $0x60] sm:$0xff]  ;;  %v520_v16 = vld [vmem:[#allocation7 + $0x58] sm:$0xff]  ;;  %v519_v17 = vld [vmem:[#allocation7 + $0x50] sm:$0xff] }
  0x42   :  { %245 = vmatpush1.msra.mxu1 %v99_v50  ;;  %174 = vmatpush1.msra.mxu0 %v97_v53  ;;  %v518_v18 = vld [vmem:[#allocation7 + $0x48] sm:$0xff]  ;;  %v517_v19 = vld [vmem:[#allocation7 + $0x40] sm:$0xff]  ;;  %v516_v20 = vld [vmem:[#allocation7 + $0x38] sm:$0xff]  ;;  %v449_v53 = vsub.s32 2, %v440_v29 }
  0x43   :  { %246 = vmatprep.subr.mxu1 %v96_v52  ;;  %175 = vmatprep.subr.mxu0 %v94_v55  ;;  %v515_v21 = vld [vmem:[#allocation7 + $0x30] sm:$0xff]  ;;  %v514_v22 = vld [vmem:[#allocation7 + $0x28] sm:$0xff]  ;;  %v513_v23 = vld [vmem:[#allocation7 + $0x20] sm:$0xff] }
  0x44   :  { %247 = vmatpush1.msra.mxu1 %v95_v54  ;;  %176 = vmatpush1.msra.mxu0 %v93_v57  ;;  %v512_v24 = vld [vmem:[#allocation7 + $0x18] sm:$0xff]  ;;  %v511_v25 = vld [vmem:[#allocation7 + $0x10] sm:$0xff]  ;;  %v510_v26 = vld [vmem:[#allocation7 + $0x8] sm:$0xff] }
  0x45   :  { %248 = vmatprep.subr.mxu1 %v92_v56  ;;  %177 = vmatprep.subr.mxu0 %v90_v59  ;;  %v509_v27 = vld [vmem:[#allocation7] sm:$0xff] }
  0x46   :  { %249 = vmatpush1.msra.mxu1 %v91_v58  ;;  %178 = vmatpush1.msra.mxu0 %v89_v61  ;;  %v437_v32 = vld [vmem:[%s946_s5] sm:$0xf] }
  0x47   :  { %250 = vmatprep.subr.mxu1 %v88_v60  ;;  %179 = vmatprep.subr.mxu0 %v86_v63  ;;  %v74_v36 = vld [vmem:[%s943_s2] sm:$0xff]  ;;  %v442_v37 = vrot.slane %v437_v32, %v441_v30  ;;  %v446_v42 = vrot.slane %v437_v32, %v445_v33  ;;  %v450_v56 = vrot.slane %v437_v32, %v449_v53 }
  0x48   :  { %251 = vmatpush1.msra.mxu1 %v87_v62  ;;  %180 = vmatpush1.msra.mxu0 %v85_v4  ;;  %v630_v39 = vld [vmem:[%s947_s6 + $0x1] ss:$0 sm:$0xff]  ;;  %v453_v62 = vsub.s32 3, %v440_v29 }
  0x49   :  { %285 = vmatmul.mubr.f32.vlgmr.msra.gmra.mxu1 %v84_v1  ;;  %323 = vmatprep.subr.mxu1 %v81_v2  ;;  %v482_v47 = vmul.f32 %v630_v39, %v74_v36 }
  0x4a   :  { %324 = vmatpush1.msra.mxu1 %v80_v3  ;;  %214 = vmatmul.mubr.f32.vlgmr.msra.gmra.mxu0 %v84_v1 }
  0x4b   :  { %325 = vmatprep.subr.mxu1 %v77_v5  ;;  %359 = vmatprep.mubr.f32.mxu1 %v828_v0  ;;  %v454_v5 = vrot.slane %v437_v32, %v453_v62 }
  0x4c   :  { %326 = vmatpush1.msra.mxu1 %v76_v6  ;;  %651 = vmatprep.subr.mxu0 %v828_v0 }
  0x4d   :  { %626 = vmatmul.mubr.msk.f32.vlgmr.msra.gmra.mxu1 %vm291_vm0, %v75_v7  ;;  %394 = vmatprep.subr.mxu1 %v83_v8  ;;  %v632_v8 = vld [vmem:[%s947_s6 + $0x2] ss:$0 sm:$0xff] }
  0x4e   :  { %395 = vmatpush1.msra.mxu1 %v82_v9  ;;  %430 = vmatprep.mubr.f32.mxu1 %v828_v0 }
  0x4f   :  { %396 = vmatprep.subr.mxu1 %v79_v10  ;;  %652 = vmatpush3.msra.mxu0 %v524_v12 }
  0x50   :  { %397 = vmatpush1.msra.mxu1 %v78_v11  ;;  %653 = vmatprep.subr.mxu0 %v828_v0 }
  0x51   :  { %627 = vmatmul.mubr.msk.f32.vlgmr.msra.gmra.mxu1 %vm291_vm0, %v75_v7  ;;  %654 = vmatpush3.msra.mxu0 %v523_v13 }
  0x52   :  { %655 = vmatprep.subr.mxu0 %v828_v0  ;;  %683 = vmatprep.mubr.msk.f32.mxu0 %vm829_vm1, %v828_v0 }
  0x53   :  { %656 = vmatpush3.msra.mxu0 %v522_v14 }
  0x54   :  { %657 = vmatprep.subr.mxu0 %v828_v0 }
  0x55   :  { %658 = vmatpush3.msra.mxu0 %v521_v15 }
  0x56   :  { %659 = vmatprep.subr.mxu0 %v828_v0 }
  0x57   :  { %660 = vmatpush3.msra.mxu0 %v520_v16 }
  0x58   :  { %661 = vmatprep.subr.mxu0 %v828_v0 }
  0x59   :  { %662 = vmatpush3.msra.mxu0 %v519_v17 }
  0x5a   :  { %663 = vmatprep.subr.mxu0 %v828_v0 }
  0x5b   :  { %664 = vmatpush3.msra.mxu0 %v518_v18 }
  0x5c   :  { %665 = vmatprep.subr.mxu0 %v828_v0 }
  0x5d   :  { %666 = vmatpush3.msra.mxu0 %v517_v19 }
  0x5e   :  { %667 = vmatprep.subr.mxu0 %v828_v0 }
  0x5f   :  { %668 = vmatpush3.msra.mxu0 %v516_v20 }
  0x60   :  { %669 = vmatprep.subr.mxu0 %v828_v0 }
  0x61   :  { %670 = vmatpush3.msra.mxu0 %v515_v21 }
  0x62   :  { %671 = vmatprep.subr.mxu0 %v828_v0 }
  0x63   :  { %672 = vmatpush3.msra.mxu0 %v514_v22 }
  0x64   :  { %673 = vmatprep.subr.mxu0 %v828_v0 }
  0x65   :  { %674 = vmatpush3.msra.mxu0 %v513_v23 }
  0x66   :  { %675 = vmatprep.subr.mxu0 %v828_v0 }
  0x67   :  { %676 = vmatpush3.msra.mxu0 %v512_v24 }
  0x68   :  { %677 = vmatprep.subr.mxu0 %v828_v0 }
  0x69   :  { %678 = vmatpush3.msra.mxu0 %v511_v25 }
  0x6a   :  { %679 = vmatprep.subr.mxu0 %v828_v0 }
  0x6b   :  { %680 = vmatpush3.msra.mxu0 %v510_v26 }
  0x6c   :  { %681 = vmatprep.subr.mxu0 %v828_v0  ;;  %v628_v0 = vld [vmem:[%s947_s6] ss:$0 sm:$0xff] }
  0x6d   :  { %682 = vmatpush3.msra.mxu0 %v509_v27  ;;  %v470_v41 = vmul.f32 %v628_v0, %v74_v36 }
 0x109   :  { %v286_v31 = vpop.f32.mrf.mxu1 }
 0x10a   :  { %v215_v35 = vpop.f32.mrf.mxu0 }
 0x10b   :  { %v288_v34 = vpop.f32.mrf.mxu1 }
 0x10c   :  { %v217_v43 = vpop.f32.mrf.mxu0 }
 0x10d   :  { %v361_v38 = vpop.f32.mrf.mxu1 }
 0x10e   :  { %v362_v40 = vadd.f32 %v361_v38, %v215_v35 }
 0x10f   :  { %v363_v44 = vpop.f32.mrf.mxu1 }
 0x110   :  { %v459_v45 = vadd.f32 %v442_v37, %v362_v40  ;;  %v364_v46 = vadd.f32 %v363_v44, %v217_v43 }
 0x111   :  { %v432_v54 = vpop.f32.mrf.mxu1 }
 0x112   :  { %v471_v48 = vadd.f32 %v470_v41, %v459_v45  ;;  %v460_v49 = vadd.f32 %v446_v42, %v364_v46  ;;  %v433_v55 = vadd.f32 %v432_v54, %v286_v31 }
 0x113   :  { %v434_v1 = vpop.f32.mrf.mxu1 }
 0x114   :  { %v629_v50 = vmul.f32 -1.442695, %v471_v48  ;;  %v483_v51 = vadd.f32 %v482_v47, %v460_v49  ;;  %v461_v58 = vadd.f32 %v450_v56, %v433_v55  ;;  %v435_v4 = vadd.f32 %v434_v1, %v288_v34 }
 0x116   :  { %697 = vpow2.f32 %v629_v50  ;;  %v631_v52 = vmul.f32 -1.442695, %v483_v51  ;;  %v462_v10 = vadd.f32 %v454_v5, %v435_v4 }
 0x118   :  { %699 = vpow2.f32 %v631_v52 }
 0x123   :  { %v698_v57 = vpop.eup %697 }
 0x124   :  { %v475_v59 = vadd.f32 1.0, %v698_v57 }
 0x125   :  { %v700_v60 = vpop.eup %699 }
 0x126   :  { %701 = vrcp.f32 %v475_v59  ;;  %v487_v61 = vadd.f32 1.0, %v700_v60 }
 0x127   :  { %703 = vtanh.f32 %v461_v58 }
 0x128   :  { %705 = vrcp.f32 %v487_v61 }
 0x133   :  { %v702_v63 = vpop.eup %701 }
 0x134   :  { %v704_v2 = vpop.eup %703 }
 0x135   :  { %v706_v3 = vpop.eup %705  ;;  %v492_v7 = vmul.f32 %v704_v2, %v702_v63 }
 0x136   :  { %v491_v6 = vmul.f32 %v706_v3, %v74_v36 }
 0x138   :  { %v493_v9 = vadd.f32 %v492_v7, %v491_v6 }
 0x13a   :  { %v498_v11 = vmul.f32 %v632_v8, %v493_v9  ;;  %508 = vst [vmem:[#allocation9] sm:$0xff] %v493_v9 }
 0x13c   :  { %v499_v12 = vadd.f32 %v498_v11, %v462_v10 }
 0x13e   :  { %v633_v13 = vmul.f32 -1.442695, %v499_v12 }
 0x140   :  { %707 = vpow2.f32 %v633_v13 }
 0x141   :  { %709 = vtanh.f32 %v493_v9 }
 0x14d   :  { %v708_v14 = vpop.eup %707 }
 0x14e   :  { %v503_v15 = vadd.f32 1.0, %v708_v14  ;;  %v710_v16 = vpop.eup %709 }
 0x150   :  { %711 = vrcp.f32 %v503_v15 }
 0x15d   :  { %v712_v17 = vpop.eup %711 }
 0x15e   :  { %v507_v18 = vmul.f32 %v712_v17, %v710_v16 }
 0x160   :  { %684 = vmatmul.mubr.f32.vlgmr.msra.gmra.mxu0 %v507_v18 }
 0x161   :  { %784 = shalt.err (!%p781_p5)
}
 0x162   :  { %615 = dma.vmem_to_hbm [thread:$0]  %s613_s15, 128, %s950_s9, [#allocation10]  }
 0x163   :  { %s831_s18 = smov [#allocation8]  }
 0x164   :  { %s602_s19 = sshll.u32 %s831_s18, 4  ;;  %s603_s19 = int_to_ptr.vmem [resolvable:$true] %s602_s19 }
 0x165   :  { %s793_s20 = scalar_lea.vmem %s603_s19, 128  ;;  %p798_p7 = scmp.lt.s32.totalorder %s603_s19, %s603_s19 }
 0x166   :  { %p794_p6 = scmp.ne.s32.totalorder %s603_s19, %s793_s20  ;;  %p799_p8 = scmp.lt.s32.totalorder %s793_s20, %s793_s20 }
 0x168   :  { %p800_p9 = por %p799_p8, %p798_p7 }
 0x16a   :  { %p801_p10 = pnand %p800_p9, %p794_p6 }
 0x220   :  { %v591_v19 = vpop.f32.mrf.mxu0 }
 0x221   :  { %595 = vst [vmem:[#allocation8] sm:$0xff] %v591_v19 }
 0x222   :  { %v685_v20 = vpop.f32.mrf.mxu0 }
 0x223   :  { %804 = shalt.err (!%p801_p10)
}
 0x224   :  { %605 = dma.vmem_to_hbm [thread:$0]  %s603_s19, 128, %s949_s8, [#allocation4]  }
 0x225   :  { %817 = dma.done.wait [#allocation4], 128  }
 0x226   :  { %818 = vsyncadd [#allocation4], 4294967168 }
 0x227   :  { %819 = dma.done.wait [#allocation10], 128  }
 0x228   :  { %820 = vsyncadd [#allocation10], 4294967168 }
 0x229   :  { %622 = vsyncpa [#allocation3], 1 }
 0x22a   :  { %623 = vsyncpa [#allocation6], 1 }
 0x22b   :  { %624 = vsyncpa [#allocation4], 1 }
 0x22c   :  { %625 = vsyncpa [#allocation10], 1 }

</bundles_post_ra>
